<compile_context>
chip_gen: v7x
topology: tpu7x:2x2x1
jax: 0.10.0
libtpu: 0.0.40
codegen_flags: <defaults>
</compile_context>

<pallas_src>
import functools

import jax
import jax.numpy as jnp
from jax.experimental import pallas as pl
from jax.experimental.pallas import tpu as pltpu


# ------------------------------ Pallas kernel ------------------------------ #

def _discriminator_kernel(seed_ref, b3_ref, x_ref, w1_ref, b1_ref,
                          w2_ref, b2_ref, w3_ref, out_ref, *, training):
    """Fused 3-layer MLP.

    seed_ref: (1,) i32 SMEM      b3_ref: (1,) f32 SMEM (layer-3 scalar bias)
    x_ref:  (tb, F)      f32  (cast to bf16 in-kernel)
    w1_ref: (F, H_pad)   bf16    b1_ref: (1, H_pad) f32
    w2_ref: (H_pad,H_pad)bf16    b2_ref: (1, H_pad) f32
    w3_ref: (1, H_pad)   bf16
    out_ref:(1, 1, tb)   f32  (lane-major logits -> sigmoid)
    """
    if training:
        # Per-tile independent dropout streams.
        pltpu.prng_seed(seed_ref[0] + pl.program_id(0))

    def dropout(h):
        if not training:
            return h  # eval mode: identity (matches nn.Dropout.eval()).
        bits = pltpu.prng_random_bits(h.shape)
        keep = jnp.bitwise_and(bits, 1) == 1          # p = 0.5 keep mask
        return jnp.where(keep, h * 2.0, 0.0)          # inverted-dropout scale

    # In-kernel bf16 cast of the f32 input tile (hidden under the MXU work).
    x = x_ref[...].astype(jnp.bfloat16)

    # Layer 1: MXU matmul (bf16 in, f32 acc) + bias + ReLU + dropout.
    h1 = jnp.dot(x, w1_ref[...], preferred_element_type=jnp.float32)
    h1 = jnp.maximum(h1 + b1_ref[...], 0.0)
    h1 = dropout(h1)

    # Layer 2.
    h2 = jnp.dot(h1.astype(jnp.bfloat16), w2_ref[...],
                 preferred_element_type=jnp.float32)
    h2 = jnp.maximum(h2 + b2_ref[...], 0.0)
    h2 = dropout(h2)

    # Layer 3 computed lane-major: (1, H_pad) . (tb, H_pad)^T -> (1, tb), so the
    # store is one dense f32 row per tile (no 128-wide padded writeback).
    logits = jax.lax.dot_general(
        w3_ref[...], h2.astype(jnp.bfloat16),
        dimension_numbers=(((1,), (1,)), ((), ())),
        preferred_element_type=jnp.float32) + b3_ref[0]

    # Sigmoid: exp on EUP, divide replaced by EUP approx reciprocal.
    out_ref[0] = pl.reciprocal(1.0 + jnp.exp(-logits), approx=True)


# ------------------------------ JAX wrapper -------------------------------- #

def _round_up(x, m):
    return (x + m - 1) // m * m


def prepare_params(params):
    """One-time pad/transpose/bf16 cast of the weights into kernel layout.

    Call once (e.g. at init) and reuse the result across forward calls, so the
    per-call wrapper does no weight-sized pad/cast work.
    """
    w1, b1 = params["w1"], params["b1"]   # torch layout: w1 [H, F]
    w2, b2 = params["w2"], params["b2"]   # w2 [H, H]
    w3, b3 = params["w3"], params["b3"]   # w3 [1, H]

    H, F = w1.shape
    h_pad = _round_up(H, 128)
    f32, bf16 = jnp.float32, jnp.bfloat16

    # Zero padding keeps padded lanes exactly inert through matmul/ReLU/dropout.
    w1_p = jnp.zeros((F, h_pad), bf16).at[:, :H].set(w1.T.astype(bf16))
    w2_p = jnp.zeros((h_pad, h_pad), bf16).at[:H, :H].set(w2.T.astype(bf16))
    w3_p = jnp.zeros((1, h_pad), bf16).at[:, :H].set(w3.astype(bf16))
    b1_p = jnp.zeros((1, h_pad), f32).at[0, :H].set(b1.astype(f32))
    b2_p = jnp.zeros((1, h_pad), f32).at[0, :H].set(b2.astype(f32))
    b3_p = jnp.asarray(b3, f32).reshape(1)   # scalar bias -> SMEM

    return {"w1_p": w1_p, "b1_p": b1_p, "w2_p": w2_p, "b2_p": b2_p,
            "w3_p": w3_p, "b3_p": b3_p, "feature_dim": F, "hidden_dim": H,
            "h_pad": h_pad}


def discriminator_forward(prepped, inputs, *, training=False, dropout_seed=0):
    """inputs: [B, feature_dim] float32 (PyTorch layout). Returns [B, 1] f32.

    NOTE: vary `dropout_seed` per training step; masks are a deterministic
    function of (seed, tile index).
    """
    F = prepped["feature_dim"]
    h_pad = prepped["h_pad"]
    w1_p, b1_p = prepped["w1_p"], prepped["b1_p"]
    w2_p, b2_p = prepped["w2_p"], prepped["b2_p"]
    w3_p, b3_p = prepped["w3_p"], prepped["b3_p"]

    B, Fin = inputs.shape
    assert Fin == F, "feature_dim mismatch between params and inputs"

    # Batch tiling: sublane-friendly (16), capped at 512 rows per tile, and
    # split into >=2 tiles whenever possible so the "parallel" grid axis can
    # shard across both v7x TensorCores.
    b_base = _round_up(B, 16)
    tb = min(b_base, 512)
    if b_base >= 32 and b_base // tb < 2:
        tb = _round_up((b_base + 1) // 2, 16)
    b_pad = _round_up(b_base, tb)
    num_tiles = b_pad // tb

    # Only row-pad the batch when needed (no feature pad, no dtype cast here).
    x = inputs
    if b_pad != B:
        x = jnp.pad(inputs, ((0, b_pad - B), (0, 0)))

    seed = jnp.asarray([dropout_seed], jnp.int32)

    # Scoped-VMEM sizing from the padded shapes (only overrides the default
    # when the resident weights / tiles would actually exceed it).
    weight_bytes = (F * h_pad + h_pad * h_pad + h_pad) * 2 + 2 * h_pad * 4
    tile_bytes = tb * F * 4 + tb * 4
    vmem_need = 2 * tile_bytes + 2 * weight_bytes + (2 << 20)
    vmem_limit = vmem_need if vmem_need > (16 << 20) else None
    # TODO(synk): for very large F/H, add a K-reduction grid axis ("arbitrary",
    # last) with a VMEM accumulator instead of keeping full W1 resident, and
    # single-buffer the grid-invariant weights.

    resident = lambda i: (0, 0)   # weights/biases stay in VMEM across batch tiles

    out3d = pl.pallas_call(
        functools.partial(_discriminator_kernel, training=training),
        out_shape=jax.ShapeDtypeStruct((num_tiles, 1, tb), jnp.float32),
        grid=(num_tiles,),
        in_specs=[
            pl.BlockSpec(memory_space=pltpu.MemorySpace.SMEM),    # seed
            pl.BlockSpec(memory_space=pltpu.MemorySpace.SMEM),    # b3 scalar
            pl.BlockSpec((tb, F), lambda i: (i, 0)),              # x tile (f32)
            pl.BlockSpec((F, h_pad), resident),                   # W1
            pl.BlockSpec((1, h_pad), resident),                   # b1
            pl.BlockSpec((h_pad, h_pad), resident),               # W2
            pl.BlockSpec((1, h_pad), resident),                   # b2
            pl.BlockSpec((1, h_pad), resident),                   # W3
        ],
        out_specs=pl.BlockSpec((1, 1, tb), lambda i: (i, 0, 0)),
        compiler_params=pltpu.CompilerParams(
            dimension_semantics=("parallel",),
            vmem_limit_bytes=vmem_limit),
    )(seed, b3_p, x, w1_p, b1_p, w2_p, b2_p, w3_p)

    return out3d.reshape(b_pad, 1)[:B]


# ----------------------------- Parameter setup ----------------------------- #

def make_params(key, feature_dim, hidden_dim):
    """Mirrors the PyTorch init: layer1/2 ~ N(0, 0.01), layer3 ~ N(0, 0.3), bias 0."""
    k1, k2, k3 = jax.random.split(key, 3)
    return {
        "w1": 0.01 * jax.random.normal(k1, (hidden_dim, feature_dim), jnp.float32),
        "b1": jnp.zeros((hidden_dim,), jnp.float32),
        "w2": 0.01 * jax.random.normal(k2, (hidden_dim, hidden_dim), jnp.float32),
        "b2": jnp.zeros((hidden_dim,), jnp.float32),
        "w3": 0.3 * jax.random.normal(k3, (1, hidden_dim), jnp.float32),
        "b3": jnp.zeros((1,), jnp.float32),
    }


def _reference_forward(params, x):
    """Pure-JAX f32 reference (eval mode) for a numeric sanity check."""
    h = jnp.maximum(x @ params["w1"].T + params["b1"], 0.0)
    h = jnp.maximum(h @ params["w2"].T + params["b2"], 0.0)
    return jax.nn.sigmoid(h @ params["w3"].T + params["b3"])


# ---------------------------------- Main ----------------------------------- #

if __name__ == "__main__":
    key = jax.random.PRNGKey(0)
    kparams, kinput = jax.random.split(key)

    batch, feature_dim, hidden_dim = 16, 64, 32
    params = make_params(kparams, feature_dim, hidden_dim)
    prepped = prepare_params(params)   # one-time pad/transpose/cast, reused per call
    x = jax.random.normal(kinput, (batch, feature_dim), jnp.float32)

    out = discriminator_forward(prepped, x, training=False)
    out = jax.block_until_ready(out)

    assert out.shape == (batch, 1)
    assert bool(jnp.all(jnp.isfinite(out)))
    assert bool(jnp.all((out > 0.0) & (out < 1.0)))

    # bf16-matmul kernel vs f32 reference (values are near 0.5, tiny abs error).
    ref = _reference_forward(params, x)
    assert bool(jnp.all(jnp.abs(out - ref) < 1e-2))

    print("KERNEL_OK")
</pallas_src>

<mosaic_0001>
module attributes {stable_mosaic.version = 11 : i64} {
  func.func @_discriminator_kernel(%arg0: i32, %arg1: memref<1xi32, #tpu.memory_space<smem>>, %arg2: memref<1xf32, #tpu.memory_space<smem>>, %arg3: memref<16x64xf32, #tpu.memory_space<vmem>>, %arg4: memref<64x128xbf16, #tpu.memory_space<vmem>>, %arg5: memref<1x128xf32, #tpu.memory_space<vmem>>, %arg6: memref<128x128xbf16, #tpu.memory_space<vmem>>, %arg7: memref<1x128xf32, #tpu.memory_space<vmem>>, %arg8: memref<1x128xbf16, #tpu.memory_space<vmem>>, %arg9: memref<1x1x16xf32, #tpu.memory_space<vmem>>) attributes {dimension_semantics = [#tpu.dimension_semantics<parallel>], iteration_bounds = array<i64: 1>, scalar_prefetch = 0 : i64, scratch_operands = 0 : i64, tpu.core_type = #tpu.core_type<tc>, window_params = [{transform_indices = @transform_0, window_bounds = array<i64: 1>}, {transform_indices = @transform_1, window_bounds = array<i64: 1>}, {transform_indices = @transform_2, window_bounds = array<i64: 16, 64>}, {pipeline_mode = #tpu.pipeline_mode<synchronous>, transform_indices = @transform_3, window_bounds = array<i64: 64, 128>}, {pipeline_mode = #tpu.pipeline_mode<synchronous>, transform_indices = @transform_4, window_bounds = array<i64: 1, 128>}, {pipeline_mode = #tpu.pipeline_mode<synchronous>, transform_indices = @transform_5, window_bounds = array<i64: 128, 128>}, {pipeline_mode = #tpu.pipeline_mode<synchronous>, transform_indices = @transform_6, window_bounds = array<i64: 1, 128>}, {pipeline_mode = #tpu.pipeline_mode<synchronous>, transform_indices = @transform_7, window_bounds = array<i64: 1, 128>}, {transform_indices = @transform_8, window_bounds = array<i64: 1, 1, 16>}]} {
    %c0 = arith.constant 0 : index
    %c0_0 = arith.constant 0 : index
    %0 = vector.load %arg3[%c0, %c0_0] : memref<16x64xf32, #tpu.memory_space<vmem>>, vector<16x64xf32>
    %1 = arith.truncf %0 : vector<16x64xf32> to vector<16x64xbf16>
    %c0_1 = arith.constant 0 : index
    %c0_2 = arith.constant 0 : index
    %2 = vector.load %arg4[%c0_1, %c0_2] : memref<64x128xbf16, #tpu.memory_space<vmem>>, vector<64x128xbf16>
    %cst = arith.constant dense<0.000000e+00> : vector<16x128xf32>
    %3 = tpu.matmul %1, %2, %cst {dimension_numbers = #tpu.dot_dimension_numbers<[1], [0], [0], [1], [0, 0, 1, 1], [], []>} : vector<16x64xbf16>, vector<64x128xbf16>, vector<16x128xf32> -> vector<16x128xf32>
    %c0_3 = arith.constant 0 : index
    %c0_4 = arith.constant 0 : index
    %4 = vector.load %arg5[%c0_3, %c0_4] : memref<1x128xf32, #tpu.memory_space<vmem>>, vector<1x128xf32>
    %5 = vector.broadcast %4 : vector<1x128xf32> to vector<16x128xf32>
    %6 = arith.addf %3, %5 : vector<16x128xf32>
    %cst_5 = arith.constant 0.000000e+00 : f32
    %7 = vector.broadcast %cst_5 : f32 to vector<16x128xf32>
    %8 = arith.maximumf %6, %7 : vector<16x128xf32>
    %9 = arith.truncf %8 : vector<16x128xf32> to vector<16x128xbf16>
    %c0_6 = arith.constant 0 : index
    %c0_7 = arith.constant 0 : index
    %10 = vector.load %arg6[%c0_6, %c0_7] : memref<128x128xbf16, #tpu.memory_space<vmem>>, vector<128x128xbf16>
    %cst_8 = arith.constant dense<0.000000e+00> : vector<16x128xf32>
    %11 = tpu.matmul %9, %10, %cst_8 {dimension_numbers = #tpu.dot_dimension_numbers<[1], [0], [0], [1], [0, 0, 1, 1], [], []>} : vector<16x128xbf16>, vector<128x128xbf16>, vector<16x128xf32> -> vector<16x128xf32>
    %c0_9 = arith.constant 0 : index
    %c0_10 = arith.constant 0 : index
    %12 = vector.load %arg7[%c0_9, %c0_10] : memref<1x128xf32, #tpu.memory_space<vmem>>, vector<1x128xf32>
    %13 = vector.broadcast %12 : vector<1x128xf32> to vector<16x128xf32>
    %14 = arith.addf %11, %13 : vector<16x128xf32>
    %cst_11 = arith.constant 0.000000e+00 : f32
    %15 = vector.broadcast %cst_11 : f32 to vector<16x128xf32>
    %16 = arith.maximumf %14, %15 : vector<16x128xf32>
    %c0_12 = arith.constant 0 : index
    %c0_13 = arith.constant 0 : index
    %17 = vector.load %arg8[%c0_12, %c0_13] : memref<1x128xbf16, #tpu.memory_space<vmem>>, vector<1x128xbf16>
    %18 = arith.truncf %16 : vector<16x128xf32> to vector<16x128xbf16>
    %cst_14 = arith.constant dense<0.000000e+00> : vector<1x16xf32>
    %19 = tpu.matmul %17, %18, %cst_14 {dimension_numbers = #tpu.dot_dimension_numbers<[1], [1], [0], [0], [0, 0, 1, 0], [], []>} : vector<1x128xbf16>, vector<16x128xbf16>, vector<1x16xf32> -> vector<1x16xf32>
    %c0_15 = arith.constant 0 : index
    %20 = memref.load %arg2[%c0_15] : memref<1xf32, #tpu.memory_space<smem>>
    %21 = vector.broadcast %20 : f32 to vector<1x16xf32>
    %22 = arith.addf %19, %21 : vector<1x16xf32>
    %cst_16 = arith.constant 0.000000e+00 : f32
    %23 = vector.broadcast %cst_16 : f32 to vector<1x16xf32>
    %24 = arith.subf %23, %22 : vector<1x16xf32>
    %25 = math.exp %24 : vector<1x16xf32>
    %cst_17 = arith.constant 1.000000e+00 : f32
    %26 = vector.broadcast %cst_17 : f32 to vector<1x16xf32>
    %27 = arith.addf %26, %25 : vector<1x16xf32>
    %28 = tpu.reciprocal %27 {approx = true} : vector<1x16xf32> -> vector<1x16xf32>
    %c0_18 = arith.constant 0 : index
    %c0_19 = arith.constant 0 : index
    %c0_20 = arith.constant 0 : index
    %29 = vector.load %arg9[%c0_18, %c0_19, %c0_20] : memref<1x1x16xf32, #tpu.memory_space<vmem>>, vector<1x1x16xf32>
    %30 = vector.shape_cast %29 : vector<1x1x16xf32> to vector<1x16xf32>
    %31 = vector.shape_cast %28 : vector<1x16xf32> to vector<1x1x16xf32>
    tpu.vector_store %arg9[%c0_18, %c0_19, %c0_20], %31 {strides = array<i32>} : memref<1x1x16xf32, #tpu.memory_space<vmem>>, vector<1x1x16xf32>,
    return
  }
  func.func @transform_0(%arg0: i32) -> i32 {
    %c0_i32 = arith.constant 0 : i32
    %c0_i32_0 = arith.constant 0 : i32
    return %c0_i32 : i32
  }
  func.func @transform_1(%arg0: i32) -> i32 {
    %c0_i32 = arith.constant 0 : i32
    %c0_i32_0 = arith.constant 0 : i32
    return %c0_i32 : i32
  }
  func.func @transform_2(%arg0: i32) -> (i32, i32) {
    %c0_i32 = arith.constant 0 : i32
    %c0_i32_0 = arith.constant 0 : i32
    return %arg0, %c0_i32 : i32, i32
  }
  func.func @transform_3(%arg0: i32) -> (i32, i32) {
    %c0_i32 = arith.constant 0 : i32
    %c0_i32_0 = arith.constant 0 : i32
    %c0_i32_1 = arith.constant 0 : i32
    return %c0_i32, %c0_i32_0 : i32, i32
  }
  func.func @transform_4(%arg0: i32) -> (i32, i32) {
    %c0_i32 = arith.constant 0 : i32
    %c0_i32_0 = arith.constant 0 : i32
    %c0_i32_1 = arith.constant 0 : i32
    return %c0_i32, %c0_i32_0 : i32, i32
  }
  func.func @transform_5(%arg0: i32) -> (i32, i32) {
    %c0_i32 = arith.constant 0 : i32
    %c0_i32_0 = arith.constant 0 : i32
    %c0_i32_1 = arith.constant 0 : i32
    return %c0_i32, %c0_i32_0 : i32, i32
  }
  func.func @transform_6(%arg0: i32) -> (i32, i32) {
    %c0_i32 = arith.constant 0 : i32
    %c0_i32_0 = arith.constant 0 : i32
    %c0_i32_1 = arith.constant 0 : i32
    return %c0_i32, %c0_i32_0 : i32, i32
  }
  func.func @transform_7(%arg0: i32) -> (i32, i32) {
    %c0_i32 = arith.constant 0 : i32
    %c0_i32_0 = arith.constant 0 : i32
    %c0_i32_1 = arith.constant 0 : i32
    return %c0_i32, %c0_i32_0 : i32, i32
  }
  func.func @transform_8(%arg0: i32) -> (i32, i32, i32) {
    %c0_i32 = arith.constant 0 : i32
    %c0_i32_0 = arith.constant 0 : i32
    %c0_i32_1 = arith.constant 0 : i32
    return %arg0, %c0_i32, %c0_i32_0 : i32, i32, i32
  }
}

</mosaic_0001>

<bundles_post_ra>
// kernel: tpu_custom_call.1
= control target key start
LH: loop header
LB: loop body
LE: loop exit
PB: predicated region body
PF: predicated region fallthrough
CT: control target
= control target key end

     0   :  { %15 = vsyncpa [#allocation5], 0  ;;  %s658_s0 = inlined_call_operand.<no memory space> [shape: s32[1], index: 0, kind: input, shape index: {}]   ;;  %s659_s1 = inlined_call_operand.<no memory space> [shape: f32[1], index: 1, kind: input, shape index: {}]   ;;  %s660_s2 = inlined_call_operand.hbm [shape: f32[16,64], index: 2, kind: input, shape index: {}]   ;;  %s661_s3 = inlined_call_operand.hbm [shape: bf16[64,128], index: 3, kind: input, shape index: {}]   ;;  %s662_s4 = inlined_call_operand.vmem [shape: f32[1,128], index: 4, kind: input, shape index: {}]   ;;  %s663_s5 = inlined_call_operand.hbm [shape: bf16[128,128], index: 5, kind: input, shape index: {}]   ;;  %s664_s6 = inlined_call_operand.vmem [shape: f32[1,128], index: 6, kind: input, shape index: {}]   ;;  %s665_s7 = inlined_call_operand.vmem [shape: bf16[1,128], index: 7, kind: input, shape index: {}]   ;;  %s666_s8 = inlined_call_operand.hbm [shape: f32[1,1,16], index: 8, kind: output, shape index: {}]  }
   0x1   :  { %16 = vsyncpa [#allocation8], 0 }
   0x2   :  { %17 = vsyncpa [#allocation6], 0  ;;  %s534_s26 = smov [#allocation7]   ;;  %s440_s30 = scalar_lea.hbm %s661_s3, 512 }
   0x3   :  { %s39_s27 = sshll.u32 %s534_s26, 4  ;;  %p441_p0 = scmp.ne.s32.totalorder %s661_s3, %s440_s30  ;;  %s40_s27 = int_to_ptr.vmem [resolvable:$true] %s39_s27 }
   0x4   :  { %p444_p1 = scmp.lt.u32.totalorder %s440_s30, %s661_s3 }
   0x6   :  { %p446_p2 = pnand %p444_p1, %p441_p0 }
   0x8   :  { %449 = shalt.err (!%p446_p2)
}
   0x9   :  { %s450_s13 = scalar_lea.vmem %s40_s27, 512  ;;  %p455_p4 = scmp.lt.s32.totalorder %s40_s27, %s40_s27 }
   0xa   :  { %p451_p3 = scmp.ne.s32.totalorder %s40_s27, %s450_s13  ;;  %p456_p5 = scmp.lt.s32.totalorder %s450_s13, %s450_s13 }
   0xc   :  { %p457_p6 = por %p456_p5, %p455_p4 }
   0xe   :  { %p458_p7 = pnand %p457_p6, %p451_p3 }
  0x10   :  { %461 = shalt.err (!%p458_p7)
}
  0x11   :  { %s535_s14 = smov 64   ;;  %s536_s15 = smov 4  }
  0x12   :  { %45 = dma.hbm_to_vmem [thread:$0]  %s661_s3, 512, %s40_s27, [#allocation8], %s535_s14, %s535_s14, %s536_s15  }
  0x13   :  { %s537_s18 = smov [#allocation4]   ;;  %s462_s22 = scalar_lea.hbm %s660_s2, 256 }
  0x14   :  { %s27_s19 = sshll.u32 %s537_s18, 4  ;;  %p463_p8 = scmp.ne.s32.totalorder %s660_s2, %s462_s22  ;;  %s28_s19 = int_to_ptr.vmem [resolvable:$true] %s27_s19 }
  0x15   :  { %p466_p9 = scmp.lt.u32.totalorder %s462_s22, %s660_s2 }
  0x17   :  { %p468_p10 = pnand %p466_p9, %p463_p8 }
  0x19   :  { %471 = shalt.err (!%p468_p10)
}
  0x1a   :  { %s472_s26 = scalar_lea.vmem %s28_s19, 256  ;;  %p477_p12 = scmp.lt.s32.totalorder %s28_s19, %s28_s19 }
  0x1b   :  { %p473_p11 = scmp.ne.s32.totalorder %s28_s19, %s472_s26  ;;  %p478_p13 = scmp.lt.s32.totalorder %s472_s26, %s472_s26 }
  0x1d   :  { %p479_p0 = por %p478_p13, %p477_p12 }
  0x1f   :  { %p480_p1 = pnand %p479_p0, %p473_p11 }
  0x21   :  { %483 = shalt.err (!%p480_p1)
}
  0x22   :  { %s538_s3 = smov 128   ;;  %s539_s27 = smov 8  }
  0x23   :  { %33 = dma.hbm_to_vmem [thread:$0]  %s660_s2, 256, %s28_s19, [#allocation5], %s538_s3, %s538_s3, %s539_s27  }
  0x24   :  { %s540_s30 = smov [#allocation9]   ;;  %s484_s12 = scalar_lea.hbm %s663_s5, 1024 }
  0x25   :  { %s53_s9 = sshll.u32 %s540_s30, 4  ;;  %p485_p2 = scmp.ne.s32.totalorder %s663_s5, %s484_s12  ;;  %s54_s9 = int_to_ptr.vmem [resolvable:$true] %s53_s9 }
  0x26   :  { %p488_p3 = scmp.lt.u32.totalorder %s484_s12, %s663_s5 }
  0x28   :  { %p490_p4 = pnand %p488_p3, %p485_p2 }
  0x2a   :  { %493 = shalt.err (!%p490_p4)
}
  0x2b   :  { %s494_s20 = scalar_lea.vmem %s54_s9, 1024  ;;  %p499_p6 = scmp.lt.s32.totalorder %s54_s9, %s54_s9 }
  0x2c   :  { %p495_p5 = scmp.ne.s32.totalorder %s54_s9, %s494_s20  ;;  %p500_p7 = scmp.lt.s32.totalorder %s494_s20, %s494_s20 }
  0x2e   :  { %p501_p8 = por %p500_p7, %p499_p6 }
  0x30   :  { %p502_p9 = pnand %p501_p8, %p495_p5 }
  0x32   :  { %505 = shalt.err (!%p502_p9)
}
  0x33   :  { %59 = dma.hbm_to_vmem [thread:$0]  %s663_s5, 1024, %s54_s9, [#allocation8], %s535_s14, %s535_s14, %s536_s15  }
  0x34   :  { %528 = dma.done.wait [#allocation5], 256  }
  0x35   :  { %529 = vsyncadd [#allocation5], 4294967040 }
  0x36   :  { %530 = dma.done.wait [#allocation8], 1536  }
  0x37   :  { %531 = vsyncadd [#allocation8], 4294965760  ;;  %v541_v0 = vmov 0.0   ;;  %vm542_vm0 = vmmov 0   ;;  %v424_v1 = vld [vmem:[#allocation7] sm:$0xff]   ;;  %v425_v2 = vld [vmem:[#allocation7 + $0x8] sm:$0xff]   ;;  %v281_v37 = vstv %s659_s1 }
  0x38   :  { %376 = vmatprep.subr.bf16.mxu0 %v541_v0  ;;  %384 = vmatprep.mubr.msk.bf16.mxu0 %vm542_vm0, %v541_v0  ;;  %v428_v3 = vld [vmem:[#allocation9] sm:$0xff]   ;;  %v426_v4 = vld [vmem:[#allocation7 + $0x10] sm:$0xff]   ;;  %v429_v5 = vld [vmem:[#allocation9 + $0x8] sm:$0xff]   ;;  %vm116_vm1 = vcmask 523264   ;;  %vm327_vm2 = vcmask 122880  }
  0x39   :  { %388 = vmatprep.subr.bf16.mxu1 %v541_v0  ;;  %404 = vmatprep.mubr.msk.bf16.mxu1 %vm542_vm0, %v541_v0  ;;  %v427_v6 = vld [vmem:[#allocation7 + $0x18] sm:$0xff]   ;;  %v74_v7 = vld [vmem:[#allocation4] sm:$0xff]  ;;  %v432_v12 = vld [vmem:[#allocation9 + $0x20] sm:$0xff]  }
  0x3a   :  { %377 = vmatpush3.bf16.msra.mxu0 %v424_v1  ;;  %389 = vmatpush3.bf16.msra.mxu1 %v428_v3  ;;  %v75_v8 = vld [vmem:[#allocation4 + $0x8] sm:$0xff]  ;;  %v430_v9 = vld [vmem:[#allocation9 + $0x10] sm:$0xff]   ;;  %v433_v13 = vld [vmem:[#allocation9 + $0x28] sm:$0xff]  }
  0x3b   :  { %378 = vmatprep.subr.bf16.mxu0 %v541_v0  ;;  %390 = vmatprep.subr.bf16.mxu1 %v541_v0  ;;  %v76_v10 = vpack.c.bf16 %v75_v8, %v74_v7  ;;  %v431_v11 = vld [vmem:[#allocation9 + $0x18] sm:$0xff]   ;;  %v434_v14 = vld [vmem:[#allocation9 + $0x30] sm:$0xff]  }
  0x3c   :  { %v435_v15 = vld [vmem:[#allocation9 + $0x38] sm:$0xff]   ;;  %v345_v16 = vld [vmem:[%s662_s4] ss:$0 sm:$0xff] }
  0x3d   :  { %v351_v26 = vld [vmem:[%s664_s6] ss:$0 sm:$0xff]  ;;  %s543_s6 = smov [#allocation10]  }
  0x3e   :  { %379 = vmatpush3.bf16.msra.mxu0 %v425_v2  ;;  %391 = vmatpush3.bf16.msra.mxu1 %v429_v5  ;;  %v278_v36 = vld [vmem:[%s665_s7] sm:$0x1]  ;;  %s335_s24 = sshll.u32 %s543_s6, 4  ;;  %s336_s24 = int_to_ptr.vmem [resolvable:$true] %s335_s24 }
  0x3f   :  { %380 = vmatprep.subr.bf16.mxu0 %v541_v0  ;;  %392 = vmatprep.subr.bf16.mxu1 %v541_v0  ;;  %s506_s7 = scalar_lea.vmem %s336_s24, 16  ;;  %s510_s1 = scalar_lea.vmem %s336_s24, 32 }
  0x40   :  { %p507_p10 = scmp.ne.s32.totalorder %s336_s24, %s506_s7  ;;  %p511_p11 = scmp.lt.s32.totalorder %s336_s24, %s336_s24 }
  0x41   :  { %p512_p12 = scmp.lt.s32.totalorder %s510_s1, %s506_s7 }
  0x42   :  { %381 = vmatpush3.bf16.msra.mxu0 %v426_v4  ;;  %393 = vmatpush3.bf16.msra.mxu1 %v430_v9 }
  0x43   :  { %382 = vmatprep.subr.bf16.mxu0 %v541_v0  ;;  %394 = vmatprep.subr.bf16.mxu1 %v541_v0  ;;  %p513_p13 = por %p512_p12, %p511_p11 }
  0x45   :  { %p514_p0 = pnand %p513_p13, %p507_p10 }
  0x46   :  { %383 = vmatpush3.bf16.msra.mxu0 %v427_v6  ;;  %395 = vmatpush3.bf16.msra.mxu1 %v431_v11 }
  0x47   :  { %408 = vmatprep.subr.bf16.mxu0 %v541_v0  ;;  %396 = vmatprep.subr.bf16.mxu1 %v541_v0 }
  0x49   :  { %385 = vmatmul.mubr.msk.bf16.vlgmr.msra.gmra.mrb[0].mxu0 %vm116_vm1, %v76_v10 }
  0x4a   :  { %410 = vmatprep.mubr.msk.bf16.mxu0 %vm542_vm0, %v541_v0  ;;  %397 = vmatpush3.bf16.msra.mxu1 %v432_v12 }
  0x4b   :  { %398 = vmatprep.subr.bf16.mxu1 %v541_v0 }
  0x4e   :  { %399 = vmatpush3.bf16.msra.mxu1 %v433_v13 }
  0x4f   :  { %400 = vmatprep.subr.bf16.mxu1 %v541_v0 }
  0x52   :  { %401 = vmatpush3.bf16.msra.mxu1 %v434_v14 }
  0x53   :  { %402 = vmatprep.subr.bf16.mxu1 %v541_v0 }
  0x56   :  { %403 = vmatpush3.bf16.msra.mxu1 %v435_v15 }
 0x11c   :  { %v154_v17 = vpop.f32.mrb[0].mxu0 }
 0x11d   :  { %v155_v18 = vadd.f32 %v345_v16, %v154_v17  ;;  %v386_v19 = vpop.f32.mrb[1].mxu0 }
 0x11e   :  { %v157_v20 = vpop.f32.mrb[2].mxu0 }
 0x11f   :  { %v158_v21 = vadd.f32 %v345_v16, %v157_v20  ;;  %v387_v22 = vpop.f32.mrb[3].mxu0  ;;  %v161_v23 = vmax.f32 %v155_v18, 0.0 }
 0x121   :  { %v162_v24 = vmax.f32 %v158_v21, 0.0 }
 0x123   :  { %v163_v25 = vpack.c.bf16 %v162_v24, %v161_v23 }
 0x125   :  { %405 = vmatmul.mubr.bf16.vlgmr.msra.gmra.mrb[0].mxu1 %v163_v25 }
 0x1f8   :  { %v269_v27 = vpop.f32.mrb[0].mxu1 }
 0x1f9   :  { %v270_v28 = vadd.f32 %v351_v26, %v269_v27  ;;  %v406_v29 = vpop.f32.mrb[1].mxu1 }
 0x1fa   :  { %v272_v30 = vpop.f32.mrb[2].mxu1 }
 0x1fb   :  { %v273_v31 = vadd.f32 %v351_v26, %v272_v30  ;;  %v407_v32 = vpop.f32.mrb[3].mxu1  ;;  %v276_v33 = vmax.f32 %v270_v28, 0.0 }
 0x1fd   :  { %v277_v34 = vmax.f32 %v273_v31, 0.0 }
 0x1ff   :  { %v279_v35 = vpack.c.bf16 %v277_v34, %v276_v33 }
 0x201   :  { %409 = vmatpush3.bf16.xpose.msra.mxu0 %v279_v35 }
 0x208   :  { %411 = vmatmul.mubr.bf16.vlgmr.msra.gmra.mrb[4].mxu0 %v278_v36 }
 0x2db   :  { %v316_v38 = vpop.f32.mrb[4].mxu0 }
 0x2dc   :  { %v317_v39 = vadd.f32 %v316_v38, %v281_v37  ;;  %v412_v40 = vpop.f32.mrb[5].mxu0 }
 0x2dd   :  { %v319_v41 = vpop.f32.mrb[6].mxu0 }
 0x2de   :  { %v322_v42 = vsub.f32 0.0, %v317_v39  ;;  %v413_v43 = vpop.f32.mrb[7].mxu0 }
 0x2e0   :  { %v323_v44 = vmul.f32 1.442695, %v322_v42 }
 0x2e2   :  { %436 = vpow2.f32 %v323_v44 }
 0x2ec   :  { %v437_v45 = vpop.eup %436 }
 0x2ed   :  { %v325_v46 = vadd.f32 1.0, %v437_v45 }
 0x2ef   :  { %438 = vrcp.f32 %v325_v46 }
 0x2f9   :  { %v439_v47 = vpop.eup %438 }
 0x2fa   :  { %328 = vst.msk [vmem:[#allocation10] sm:$0x1] %vm327_vm2, %v439_v47 }
 0x2fb   :  { %517 = shalt.err (!%p514_p0)
}
 0x2fc   :  { %s518_s3 = scalar_lea.hbm %s666_s8, 16 }
 0x2fd   :  { %p519_p1 = scmp.ne.s32.totalorder %s666_s8, %s518_s3  ;;  %p522_p2 = scmp.lt.u32.totalorder %s518_s3, %s666_s8 }
 0x2ff   :  { %p524_p3 = pnand %p522_p2, %p519_p1 }
 0x301   :  { %527 = shalt.err (!%p524_p3)
}
 0x302   :  { %338 = dma.vmem_to_hbm [thread:$0]  %s336_s24, 16, %s666_s8, [#allocation6]  }
 0x303   :  { %532 = dma.done.wait [#allocation6], 16  }
 0x304   :  { %533 = vsyncadd [#allocation6], 4294967280 }
 0x305   :  { %342 = vsyncpa [#allocation5], 1 }
 0x306   :  { %343 = vsyncpa [#allocation8], 1 }
 0x307   :  { %344 = vsyncpa [#allocation6], 1 }

</bundles_post_ra>
